<compile_context>
chip_gen: v7x
topology: tpu7x:2x2x1
jax: 0.10.0
libtpu: 0.0.40
codegen_flags: <defaults>
</compile_context>

<pallas_src>
import jax
import jax.numpy as jnp
from jax.experimental import pallas as pl
from jax.experimental.pallas import tpu as pltpu


def channel_attention(x, w1_torch, w2_torch, *, hw_tile=None):
    """x: (B, C, H, W) NCHW; w1_torch: (C//r, C, 1, 1); w2_torch: (C, C//r, 1, 1)."""
    B, C, H, W = x.shape
    Cr = w1_torch.shape[0]
    HW = H * W
    itemsize = x.dtype.itemsize
    sublane = {1: 32, 2: 16, 4: 8}.get(itemsize, 8)   # dtype-aware sublane packing

    def _ceil_div(a, b):
        return -(-a // b)

    # ---- generation-aware sizing (v5e/v6e: 128 MiB VMEM, v7x: 64 MiB per TC) ----
    try:
        vmem_cap = pltpu.get_tpu_info().vmem_capacity_bytes
    except Exception:
        vmem_cap = 64 * 1024 * 1024            # conservative default: v7x-sized VMEM
    big_vmem = vmem_cap > 96 * 1024 * 1024
    if big_vmem:                               # v5e / v6e
        hw_cap = 4096
        tile_budget = 16 * 1024 * 1024         # bytes per x buffer
        vmem_limit = 64 * 1024 * 1024
    else:                                      # v7x
        hw_cap = 2048
        tile_budget = 10 * 1024 * 1024
        vmem_limit = 48 * 1024 * 1024

    def _balanced_tile(limit):
        # Even spatial tiles (multiple of 128) rather than limit + tiny tail.
        n_steps = _ceil_div(HW, limit)
        return _ceil_div(_ceil_div(HW, n_steps), 128) * 128

    if hw_tile is None:
        hw_tile = HW if HW <= hw_cap else _balanced_tile(hw_cap)

    # ---- row-block (batch-group) selection ----
    row_budget = max(1, tile_budget // max(1, C * hw_tile * itemsize))

    def _valid_nb(d):
        if B % d != 0:
            return False
        return d == B or (d % sublane == 0 and (d * C) % sublane == 0)

    cands = [d for d in range(B, 0, -1) if _valid_nb(d)]
    nb = None
    if not big_vmem and B > 1:
        # v7x has 2 TensorCores: prefer >= 2 blocks on the "parallel" row axis
        # when divisibility allows so the bandwidth-bound stream is split.
        for d in cands:
            if d <= B // 2 and d <= row_budget:
                nb = d
                break
    if nb is None:
        for d in cands:
            if d <= row_budget:
                nb = d
                break
    if nb is None:
        nb = B
    rb_rows = nb * C
    num_row_blocks = B // nb

    # Fallback fix: if nb had to stay == B and the tile exceeds the per-buffer
    # budget, shrink the spatial tile instead of silently oversizing VMEM.
    max_hw = max(128, (tile_budget // max(1, rb_rows * itemsize)) // 128 * 128)
    if hw_tile > max_hw and HW > max_hw:
        hw_tile = _balanced_tile(max_hw)

    needs_mask = (HW % hw_tile) != 0
    num_hw_blocks = _ceil_div(HW, hw_tile)

    x_flat = x.reshape(B * C, HW)
    # PyTorch 1x1 conv: out = W @ in over channels -> transpose for row-vec matmul.
    w1 = w1_torch.reshape(Cr, C).T                 # (C, Cr)
    w2 = w2_torch.reshape(C, Cr).T                 # (Cr, C)
    w1_rows = jnp.tile(w1, (nb, 1))                # (nb*C, Cr), one copy per batch row-group

    inv_hw = 1.0 / float(HW)

    def kernel(x_ref, w1_ref, w2_ref, o_ref, sum_acc, max_acc):
        k = pl.program_id(1)
        last = pl.num_programs(1) - 1

        @pl.when(k == 0)
        def _init():
            sum_acc[...] = jnp.zeros_like(sum_acc)
            max_acc[...] = jnp.full_like(max_acc, -jnp.inf)

        x_t = x_ref[...].astype(jnp.float32)       # (rb_rows, hw_tile)

        if needs_mask:
            # Bulk tiles: plain accumulate (no iota/select) -> stays HBM-bound.
            @pl.when(k < last)
            def _bulk():
                sum_acc[...] += jnp.sum(x_t, axis=-1, keepdims=True)
                max_acc[...] = jnp.maximum(
                    max_acc[...], jnp.max(x_t, axis=-1, keepdims=True))

            # Last tile only: mask out-of-range lanes (0 for sum, -inf for max).
            @pl.when(k == last)
            def _tail():
                lane = jax.lax.broadcasted_iota(jnp.int32, (rb_rows, hw_tile), 1)
                valid = (k * hw_tile + lane) < HW
                sum_acc[...] += jnp.sum(jnp.where(valid, x_t, 0.0),
                                        axis=-1, keepdims=True)
                max_acc[...] = jnp.maximum(
                    max_acc[...],
                    jnp.max(jnp.where(valid, x_t, -jnp.inf),
                            axis=-1, keepdims=True))
        else:
            sum_acc[...] += jnp.sum(x_t, axis=-1, keepdims=True)
            max_acc[...] = jnp.maximum(
                max_acc[...], jnp.max(x_t, axis=-1, keepdims=True))

        @pl.when(k == last)
        def _finalize():
            avg_col = sum_acc[...] * inv_hw        # (rb_rows, 1)
            max_col = max_acc[...]                 # (rb_rows, 1)
            w1r = w1_ref[...].astype(jnp.float32)  # (rb_rows, Cr)

            # fc1 (1x1 conv over channels) as elementwise product + per-batch
            # channel (sublane) reduction; nb is tiny and static -> unrolled.
            pa = avg_col * w1r
            pm = max_col * w1r
            rows = []
            for b in range(nb):
                sa = jnp.sum(pa[b * C:(b + 1) * C, :], axis=0, keepdims=True)
                sm = jnp.sum(pm[b * C:(b + 1) * C, :], axis=0, keepdims=True)
                rows.append(jnp.maximum(sa, 0.0) + jnp.maximum(sm, 0.0))
            h = jnp.concatenate(rows, axis=0)      # (nb, Cr) == relu(a)+relu(m)

            # fc2 shared by both branches (linear), then sigmoid.
            w2m = w2_ref[...].astype(jnp.float32)  # (Cr, C)
            out = jnp.dot(h, w2m, preferred_element_type=jnp.float32)
            o_ref[...] = jax.nn.sigmoid(out).astype(o_ref.dtype)

    cost = pl.CostEstimate(
        flops=int(2 * B * C * HW + 4 * B * C * Cr + 2 * B * Cr * C),
        transcendentals=int(B * C),
        bytes_accessed=int(B * C * HW * itemsize + (rb_rows * Cr + Cr * C) * 4
                           + B * C * itemsize),
    )

    def _call(x_spec):
        return pl.pallas_call(
            kernel,
            out_shape=jax.ShapeDtypeStruct((B, C), x.dtype),
            grid_spec=pltpu.PrefetchScalarGridSpec(
                num_scalar_prefetch=0,
                grid=(num_row_blocks, num_hw_blocks),
                in_specs=[
                    x_spec,
                    pl.BlockSpec((rb_rows, Cr), lambda i, k: (0, 0)),  # resident weights
                    pl.BlockSpec((Cr, C), lambda i, k: (0, 0)),
                ],
                out_specs=pl.BlockSpec((nb, C), lambda i, k: (i, 0)),
                scratch_shapes=[
                    pltpu.VMEM((rb_rows, 1), jnp.float32),   # running sum
                    pltpu.VMEM((rb_rows, 1), jnp.float32),   # running max
                ],
            ),
            compiler_params=pltpu.CompilerParams(
                dimension_semantics=("parallel", "arbitrary"),
                vmem_limit_bytes=vmem_limit,
            ),
            cost_estimate=cost,
        )(x_flat, w1_rows, w2)

    default_spec = pl.BlockSpec((rb_rows, hw_tile), lambda i, k: (i, k))
    if (not big_vmem) and num_hw_blocks >= 3 and num_row_blocks > 1:
        # v7x: per-tile DMAs are short; a 3rd buffer hides the finalize bubble
        # between row blocks.  Fall back to the default spec if unsupported.
        try:
            deep_spec = pl.BlockSpec((rb_rows, hw_tile), lambda i, k: (i, k),
                                     pipeline_mode=pl.Buffered(3))
            out = _call(deep_spec)
        except Exception:
            out = _call(default_spec)
    else:
        out = _call(default_spec)

    return out.reshape(B, C, 1, 1)


def _reference(x, w1_torch, w2_torch):
    B, C, H, W = x.shape
    Cr = w1_torch.shape[0]
    w1 = w1_torch.reshape(Cr, C)
    w2 = w2_torch.reshape(C, Cr)
    avg = jnp.mean(x, axis=(2, 3))          # (B, C)
    mx = jnp.max(x, axis=(2, 3))            # (B, C)
    a = jnp.maximum(avg @ w1.T, 0.0) @ w2.T
    m = jnp.maximum(mx @ w1.T, 0.0) @ w2.T
    return jax.nn.sigmoid(a + m).reshape(B, C, 1, 1)


if __name__ == "__main__":
    # Shapes consistent with the module: in_ch=32, ratio=8 -> hidden=4.
    B, C, ratio = 2, 32, 8
    Cr = C // ratio

    key = jax.random.PRNGKey(0)
    kx, k1, k2, kx2 = jax.random.split(key, 4)

    # Conv2d weight shapes: (out, in, 1, 1).
    w1_torch = jax.random.normal(k1, (Cr, C, 1, 1), dtype=jnp.float32) * 0.1
    w2_torch = jax.random.normal(k2, (C, Cr, 1, 1), dtype=jnp.float32) * 0.1

    # Case 1: small feature map, single-tile fast path.
    x = jax.random.normal(kx, (B, C, 16, 16), dtype=jnp.float32)
    out = jax.block_until_ready(channel_attention(x, w1_torch, w2_torch))
    ref = _reference(x, w1_torch, w2_torch)
    assert out.shape == (B, C, 1, 1)
    assert jnp.allclose(out, ref, atol=1e-5, rtol=1e-5)

    # Case 2: force the streaming path (multiple spatial tiles + last-step tail masking).
    x2 = jax.random.normal(kx2, (B, C, 20, 20), dtype=jnp.float32)  # HW=400, tile=128
    out2 = jax.block_until_ready(channel_attention(x2, w1_torch, w2_torch, hw_tile=128))
    ref2 = _reference(x2, w1_torch, w2_torch)
    assert out2.shape == (B, C, 1, 1)
    assert jnp.allclose(out2, ref2, atol=1e-5, rtol=1e-5)

    print("KERNEL_OK")
</pallas_src>

<mosaic_0001>
module attributes {stable_mosaic.version = 11 : i64} {
  func.func @kernel(%arg0: i32, %arg1: i32, %arg2: memref<64x256xf32, #tpu.memory_space<vmem>>, %arg3: memref<64x4xf32, #tpu.memory_space<vmem>>, %arg4: memref<4x32xf32, #tpu.memory_space<vmem>>, %arg5: memref<2x32xf32, #tpu.memory_space<vmem>>, %arg6: memref<64x1xf32, #tpu.memory_space<vmem>>, %arg7: memref<64x1xf32, #tpu.memory_space<vmem>>) attributes {dimension_semantics = [#tpu.dimension_semantics<parallel>, #tpu.dimension_semantics<arbitrary>], iteration_bounds = array<i64: 1, 1>, scalar_prefetch = 0 : i64, scratch_operands = 2 : i64, tpu.core_type = #tpu.core_type<tc>, window_params = [{transform_indices = @transform_0, window_bounds = array<i64: 64, 256>}, {pipeline_mode = #tpu.pipeline_mode<synchronous>, transform_indices = @transform_1, window_bounds = array<i64: 64, 4>}, {pipeline_mode = #tpu.pipeline_mode<synchronous>, transform_indices = @transform_2, window_bounds = array<i64: 4, 32>}, {transform_indices = @transform_3, window_bounds = array<i64: 2, 32>}]} {
    %c0_i32 = arith.constant 0 : i32
    %0 = arith.cmpi eq, %arg1, %c0_i32 : i32
    %1 = arith.extui %0 : i1 to i32
    %c0_i32_0 = arith.constant 0 : i32
    %2 = arith.cmpi ne, %1, %c0_i32_0 : i32
    scf.if %2 {
      %cst_13 = arith.constant 0.000000e+00 : f32
      %17 = vector.broadcast %cst_13 : f32 to vector<64x1xf32>
      %c0_14 = arith.constant 0 : index
      %c0_15 = arith.constant 0 : index
      %18 = vector.load %arg6[%c0_14, %c0_15] : memref<64x1xf32, #tpu.memory_space<vmem>>, vector<64x1xf32>
      tpu.vector_store %arg6[%c0_14, %c0_15], %17 {strides = array<i32>} : memref<64x1xf32, #tpu.memory_space<vmem>>, vector<64x1xf32>,
      %cst_16 = arith.constant 0xFF800000 : f32
      %19 = vector.broadcast %cst_16 : f32 to vector<64x1xf32>
      %c0_17 = arith.constant 0 : index
      %c0_18 = arith.constant 0 : index
      %20 = vector.load %arg7[%c0_17, %c0_18] : memref<64x1xf32, #tpu.memory_space<vmem>>, vector<64x1xf32>
      tpu.vector_store %arg7[%c0_17, %c0_18], %19 {strides = array<i32>} : memref<64x1xf32, #tpu.memory_space<vmem>>, vector<64x1xf32>,
    } else {
    }
    %c0 = arith.constant 0 : index
    %c0_1 = arith.constant 0 : index
    %3 = vector.load %arg2[%c0, %c0_1] : memref<64x256xf32, #tpu.memory_space<vmem>>, vector<64x256xf32>
    %c0_2 = arith.constant 0 : index
    %c0_3 = arith.constant 0 : index
    %4 = vector.load %arg6[%c0_2, %c0_3] : memref<64x1xf32, #tpu.memory_space<vmem>>, vector<64x1xf32>
    %cst = arith.constant dense<0.000000e+00> : vector<64xf32>
    %5 = vector.multi_reduction <add>, %3, %cst [1] : vector<64x256xf32> to vector<64xf32>
    %6 = vector.shape_cast %5 : vector<64xf32> to vector<64x1xf32>
    %7 = arith.addf %4, %6 : vector<64x1xf32>
    %c0_4 = arith.constant 0 : index
    %c0_5 = arith.constant 0 : index
    %8 = vector.load %arg6[%c0_4, %c0_5] : memref<64x1xf32, #tpu.memory_space<vmem>>, vector<64x1xf32>
    tpu.vector_store %arg6[%c0_4, %c0_5], %7 {strides = array<i32>} : memref<64x1xf32, #tpu.memory_space<vmem>>, vector<64x1xf32>,
    %c0_6 = arith.constant 0 : index
    %c0_7 = arith.constant 0 : index
    %9 = vector.load %arg7[%c0_6, %c0_7] : memref<64x1xf32, #tpu.memory_space<vmem>>, vector<64x1xf32>
    %cst_8 = arith.constant dense<0xFF800000> : vector<64xf32>
    %10 = vector.multi_reduction <maximumf>, %3, %cst_8 [1] : vector<64x256xf32> to vector<64xf32>
    %11 = vector.shape_cast %10 : vector<64xf32> to vector<64x1xf32>
    %12 = arith.maximumf %9, %11 : vector<64x1xf32>
    %c0_9 = arith.constant 0 : index
    %c0_10 = arith.constant 0 : index
    %13 = vector.load %arg7[%c0_9, %c0_10] : memref<64x1xf32, #tpu.memory_space<vmem>>, vector<64x1xf32>
    tpu.vector_store %arg7[%c0_9, %c0_10], %12 {strides = array<i32>} : memref<64x1xf32, #tpu.memory_space<vmem>>, vector<64x1xf32>,
    %c0_i32_11 = arith.constant 0 : i32
    %14 = arith.cmpi eq, %arg1, %c0_i32_11 : i32
    %15 = arith.extui %14 : i1 to i32
    %c0_i32_12 = arith.constant 0 : i32
    %16 = arith.cmpi ne, %15, %c0_i32_12 : i32
    scf.if %16 {
      %c0_13 = arith.constant 0 : index
      %c0_14 = arith.constant 0 : index
      %17 = vector.load %arg6[%c0_13, %c0_14] : memref<64x1xf32, #tpu.memory_space<vmem>>, vector<64x1xf32>
      %cst_15 = arith.constant 3.906250e-03 : f32
      %18 = vector.broadcast %cst_15 : f32 to vector<64x1xf32>
      %19 = arith.mulf %17, %18 : vector<64x1xf32>
      %c0_16 = arith.constant 0 : index
      %c0_17 = arith.constant 0 : index
      %20 = vector.load %arg7[%c0_16, %c0_17] : memref<64x1xf32, #tpu.memory_space<vmem>>, vector<64x1xf32>
      %c0_18 = arith.constant 0 : index
      %c0_19 = arith.constant 0 : index
      %21 = vector.load %arg3[%c0_18, %c0_19] : memref<64x4xf32, #tpu.memory_space<vmem>>, vector<64x4xf32>
      %22 = vector.broadcast %19 : vector<64x1xf32> to vector<64x4xf32>
      %23 = arith.mulf %22, %21 : vector<64x4xf32>
      %24 = vector.broadcast %20 : vector<64x1xf32> to vector<64x4xf32>
      %25 = arith.mulf %24, %21 : vector<64x4xf32>
      %26 = vector.extract_strided_slice %23 {offsets = [0, 0], sizes = [32, 4], strides = [1, 1]} : vector<64x4xf32> to vector<32x4xf32>
      %cst_20 = arith.constant dense<0.000000e+00> : vector<4xf32>
      %27 = vector.multi_reduction <add>, %26, %cst_20 [0] : vector<32x4xf32> to vector<4xf32>
      %28 = vector.shape_cast %27 : vector<4xf32> to vector<1x4xf32>
      %29 = vector.extract_strided_slice %25 {offsets = [0, 0], sizes = [32, 4], strides = [1, 1]} : vector<64x4xf32> to vector<32x4xf32>
      %cst_21 = arith.constant dense<0.000000e+00> : vector<4xf32>
      %30 = vector.multi_reduction <add>, %29, %cst_21 [0] : vector<32x4xf32> to vector<4xf32>
      %31 = vector.shape_cast %30 : vector<4xf32> to vector<1x4xf32>
      %cst_22 = arith.constant 0.000000e+00 : f32
      %32 = vector.broadcast %cst_22 : f32 to vector<1x4xf32>
      %33 = arith.maximumf %28, %32 : vector<1x4xf32>
      %cst_23 = arith.constant 0.000000e+00 : f32
      %34 = vector.broadcast %cst_23 : f32 to vector<1x4xf32>
      %35 = arith.maximumf %31, %34 : vector<1x4xf32>
      %36 = arith.addf %33, %35 : vector<1x4xf32>
      %37 = vector.extract_strided_slice %23 {offsets = [32, 0], sizes = [32, 4], strides = [1, 1]} : vector<64x4xf32> to vector<32x4xf32>
      %cst_24 = arith.constant dense<0.000000e+00> : vector<4xf32>
      %38 = vector.multi_reduction <add>, %37, %cst_24 [0] : vector<32x4xf32> to vector<4xf32>
      %39 = vector.shape_cast %38 : vector<4xf32> to vector<1x4xf32>
      %40 = vector.extract_strided_slice %25 {offsets = [32, 0], sizes = [32, 4], strides = [1, 1]} : vector<64x4xf32> to vector<32x4xf32>
      %cst_25 = arith.constant dense<0.000000e+00> : vector<4xf32>
      %41 = vector.multi_reduction <add>, %40, %cst_25 [0] : vector<32x4xf32> to vector<4xf32>
      %42 = vector.shape_cast %41 : vector<4xf32> to vector<1x4xf32>
      %cst_26 = arith.constant 0.000000e+00 : f32
      %43 = vector.broadcast %cst_26 : f32 to vector<1x4xf32>
      %44 = arith.maximumf %39, %43 : vector<1x4xf32>
      %cst_27 = arith.constant 0.000000e+00 : f32
      %45 = vector.broadcast %cst_27 : f32 to vector<1x4xf32>
      %46 = arith.maximumf %42, %45 : vector<1x4xf32>
      %47 = arith.addf %44, %46 : vector<1x4xf32>
      %48 = tpu.concatenate %36, %47 in 0 : vector<1x4xf32>, vector<1x4xf32> -> vector<2x4xf32>
      %c0_28 = arith.constant 0 : index
      %c0_29 = arith.constant 0 : index
      %49 = vector.load %arg4[%c0_28, %c0_29] : memref<4x32xf32, #tpu.memory_space<vmem>>, vector<4x32xf32>
      %cst_30 = arith.constant dense<0.000000e+00> : vector<2x32xf32>
      %50 = tpu.matmul %48, %49, %cst_30 {dimension_numbers = #tpu.dot_dimension_numbers<[1], [0], [0], [1], [0, 0, 1, 1], [], []>} : vector<2x4xf32>, vector<4x32xf32>, vector<2x32xf32> -> vector<2x32xf32>
      %51 = arith.negf %50 : vector<2x32xf32>
      %52 = math.exp %51 : vector<2x32xf32>
      %cst_31 = arith.constant 1.000000e+00 : f32
      %53 = vector.broadcast %cst_31 : f32 to vector<2x32xf32>
      %54 = arith.addf %53, %52 : vector<2x32xf32>
      %55 = arith.divf %53, %54 : vector<2x32xf32>
      %c0_32 = arith.constant 0 : index
      %c0_33 = arith.constant 0 : index
      %56 = vector.load %arg5[%c0_32, %c0_33] : memref<2x32xf32, #tpu.memory_space<vmem>>, vector<2x32xf32>
      tpu.vector_store %arg5[%c0_32, %c0_33], %55 {strides = array<i32>} : memref<2x32xf32, #tpu.memory_space<vmem>>, vector<2x32xf32>,
    } else {
    }
    return
  }
  func.func @transform_0(%arg0: i32, %arg1: i32) -> (i32, i32) {
    %c0_i32 = arith.constant 0 : i32
    return %arg0, %arg1 : i32, i32
  }
  func.func @transform_1(%arg0: i32, %arg1: i32) -> (i32, i32) {
    %c0_i32 = arith.constant 0 : i32
    %c0_i32_0 = arith.constant 0 : i32
    %c0_i32_1 = arith.constant 0 : i32
    return %c0_i32, %c0_i32_0 : i32, i32
  }
  func.func @transform_2(%arg0: i32, %arg1: i32) -> (i32, i32) {
    %c0_i32 = arith.constant 0 : i32
    %c0_i32_0 = arith.constant 0 : i32
    %c0_i32_1 = arith.constant 0 : i32
    return %c0_i32, %c0_i32_0 : i32, i32
  }
  func.func @transform_3(%arg0: i32, %arg1: i32) -> (i32, i32) {
    %c0_i32 = arith.constant 0 : i32
    %c0_i32_0 = arith.constant 0 : i32
    return %arg0, %c0_i32 : i32, i32
  }
}

</mosaic_0001>

<bundles_post_ra>
// kernel: tpu_custom_call.1
= control target key start
LH: loop header
LB: loop body
LE: loop exit
PB: predicated region body
PF: predicated region fallthrough
CT: control target
= control target key end

     0   :  { %8 = vsyncpa [#allocation5], 0  ;;  %s666_s0 = inlined_call_operand.hbm [shape: f32[64,256], index: 0, kind: input, shape index: {}]   ;;  %s667_s1 = inlined_call_operand.vmem [shape: f32[64,4], index: 1, kind: input, shape index: {}]   ;;  %s668_s2 = inlined_call_operand.vmem [shape: f32[4,32], index: 2, kind: input, shape index: {}]   ;;  %s669_s3 = inlined_call_operand.hbm [shape: f32[2,32], index: 3, kind: output, shape index: {}]  }
   0x1   :  { %9 = vsyncpa [#allocation6], 0  ;;  %s528_s12 = smov [#allocation4]   ;;  %s480_s16 = scalar_lea.hbm %s666_s0, 2048 }
   0x2   :  { %s15_s13 = sshll.u32 %s528_s12, 4  ;;  %p481_p0 = scmp.ne.s32.totalorder %s666_s0, %s480_s16  ;;  %s16_s13 = int_to_ptr.vmem [resolvable:$true] %s15_s13 }
   0x3   :  { %p484_p1 = scmp.lt.u32.totalorder %s480_s16, %s666_s0 }
   0x5   :  { %p486_p2 = pnand %p484_p1, %p481_p0 }
   0x7   :  { %489 = shalt.err (!%p486_p2)
}
   0x8   :  { %s490_s21 = scalar_lea.vmem %s16_s13, 2048  ;;  %p495_p4 = scmp.lt.s32.totalorder %s16_s13, %s16_s13 }
   0x9   :  { %p491_p3 = scmp.ne.s32.totalorder %s16_s13, %s490_s21  ;;  %p496_p5 = scmp.lt.s32.totalorder %s490_s21, %s490_s21 }
   0xb   :  { %p497_p6 = por %p496_p5, %p495_p4 }
   0xd   :  { %p498_p7 = pnand %p497_p6, %p491_p3 }
   0xf   :  { %501 = shalt.err (!%p498_p7)
}
  0x10   :  { %s529_s22 = smov 256   ;;  %s530_s23 = smov 16  }
  0x11   :  { %21 = dma.hbm_to_vmem [thread:$0]  %s666_s0, 2048, %s16_s13, [#allocation5], %s529_s22, %s529_s22, %s530_s23  }
  0x12   :  { %524 = dma.done.wait [#allocation5], 2048  }
  0x13   :  { %525 = vsyncadd [#allocation5], 4294965248  ;;  %vm33_vm0 = vcmask 7168   ;;  %v531_v0 = vmov 0.0   ;;  %v58_v1 = vld [vmem:[#allocation4 + $0x40] sm:$0xff]  ;;  %v59_v2 = vld [vmem:[#allocation4 + $0x48] sm:$0xff] }
  0x14   :  { %38 = vst.msk [vmem:[#allocation2 + $0x20] sm:$0xff] %vm33_vm0, %v531_v0  ;;  %34 = vst.msk [vmem:[#allocation2] sm:$0xff] %vm33_vm0, %v531_v0  ;;  %461 = vmatprep.subr.mxu0 %v531_v0  ;;  %v50_v3 = vld [vmem:[#allocation4] sm:$0xff]  ;;  %v86_v4 = vadd.f32 %v59_v2, %v58_v1  ;;  %v51_v5 = vld [vmem:[#allocation4 + $0x8] sm:$0xff]  ;;  %v135_v24 = vmax.f32 %v58_v1, %v59_v2  ;;  %v532_v29 = vmov -inf   ;;  %v533_v34 = vmov 0  }
  0x15   :  { %35 = vst.msk [vmem:[#allocation2 + $0x8] sm:$0xff] %vm33_vm0, %v531_v0  ;;  %36 = vst.msk [vmem:[#allocation2 + $0x10] sm:$0xff] %vm33_vm0, %v531_v0  ;;  %v60_v6 = vld [vmem:[#allocation4 + $0x50] sm:$0xff]  ;;  %v61_v7 = vld [vmem:[#allocation4 + $0x58] sm:$0xff]  ;;  %v74_v8 = vadd.f32 %v51_v5, %v50_v3  ;;  %v123_v20 = vmax.f32 %v50_v3, %v51_v5  ;;  %474 = vset.pattern.permute.xlu1 %v533_v34  ;;  %475 = vset.pattern.permute.xlu0 %v533_v34  ;;  %vm359_vm1 = vcmask 1043456   ;;  %vm534_vm2 = vmmov 0  }
  0x16   :  { %37 = vst.msk [vmem:[#allocation2 + $0x18] sm:$0xff] %vm33_vm0, %v531_v0  ;;  %39 = vst.msk [vmem:[#allocation2 + $0x28] sm:$0xff] %vm33_vm0, %v531_v0  ;;  %v52_v9 = vld [vmem:[#allocation4 + $0x10] sm:$0xff]  ;;  %v53_v10 = vld [vmem:[#allocation4 + $0x18] sm:$0xff]  ;;  %87 = vadd.xlane.f32.xlu1 %v86_v4  ;;  %v89_v11 = vadd.f32 %v61_v7, %v60_v6  ;;  %v138_v21 = vmax.f32 %v60_v6, %v61_v7  ;;  %463 = vmatprep.mubr.msk.f32.mxu0 %vm534_vm2, %v531_v0  ;;  %vm294_vm3 = vcmask 31744   ;;  %vm353_vm4 = vcmask 1040384  }
  0x17   :  { %40 = vst.msk [vmem:[#allocation2 + $0x30] sm:$0xff] %vm33_vm0, %v531_v0  ;;  %41 = vst.msk [vmem:[#allocation2 + $0x38] sm:$0xff] %vm33_vm0, %v531_v0  ;;  %75 = vadd.xlane.f32.xlu0 %v74_v8  ;;  %v77_v12 = vadd.f32 %v53_v10, %v52_v9  ;;  %v62_v13 = vld [vmem:[#allocation4 + $0x60] sm:$0xff]  ;;  %v63_v14 = vld [vmem:[#allocation4 + $0x68] sm:$0xff]  ;;  %v126_v19 = vmax.f32 %v52_v9, %v53_v10  ;;  %vm439_vm5 = vcmask 254976  }
  0x18   :  { %v54_v15 = vld [vmem:[#allocation4 + $0x20] sm:$0xff]  ;;  %v55_v16 = vld [vmem:[#allocation4 + $0x28] sm:$0xff]  ;;  %v92_v17 = vadd.f32 %v63_v14, %v62_v13  ;;  %v64_v22 = vld [vmem:[#allocation4 + $0x70] sm:$0xff]  ;;  %43 = vst.msk [vmem:[#allocation3 + $0x8] sm:$0xff] %vm33_vm0, %v532_v29  ;;  %v141_v30 = vmax.f32 %v62_v13, %v63_v14 }
  0x19   :  { %v80_v18 = vadd.f32 %v55_v16, %v54_v15  ;;  %v65_v23 = vld [vmem:[#allocation4 + $0x78] sm:$0xff]  ;;  %v56_v25 = vld [vmem:[#allocation4 + $0x30] sm:$0xff]  ;;  %42 = vst.msk [vmem:[#allocation3] sm:$0xff] %vm33_vm0, %v532_v29  ;;  %44 = vst.msk [vmem:[#allocation3 + $0x10] sm:$0xff] %vm33_vm0, %v532_v29  ;;  %v129_v31 = vmax.f32 %v54_v15, %v55_v16 }
  0x1a   :  { %90 = vadd.xlane.f32.xlu1 %v89_v11  ;;  %v57_v26 = vld [vmem:[#allocation4 + $0x38] sm:$0xff]  ;;  %v95_v27 = vadd.f32 %v65_v23, %v64_v22  ;;  %45 = vst.msk [vmem:[#allocation3 + $0x18] sm:$0xff] %vm33_vm0, %v532_v29  ;;  %46 = vst.msk [vmem:[#allocation3 + $0x20] sm:$0xff] %vm33_vm0, %v532_v29  ;;  %v144_v32 = vmax.f32 %v64_v22, %v65_v23  ;;  %v196_v0 = vld [vmem:[%s667_s1 + $0x30] sm:$0xff] }
  0x1b   :  { %78 = vadd.xlane.f32.xlu0 %v77_v12  ;;  %v83_v28 = vadd.f32 %v57_v26, %v56_v25  ;;  %47 = vst.msk [vmem:[#allocation3 + $0x28] sm:$0xff] %vm33_vm0, %v532_v29  ;;  %48 = vst.msk [vmem:[#allocation3 + $0x30] sm:$0xff] %vm33_vm0, %v532_v29  ;;  %v132_v33 = vmax.f32 %v56_v25, %v57_v26  ;;  %v70_v35 = vld [vmem:[#allocation2 + $0x20] sm:$0xff] }
  0x1c   :  { %49 = vst.msk [vmem:[#allocation3 + $0x38] sm:$0xff] %vm33_vm0, %v532_v29  ;;  %v66_v36 = vld [vmem:[#allocation2] sm:$0xff]  ;;  %v67_v42 = vld [vmem:[#allocation2 + $0x8] sm:$0xff]  ;;  %v68_v48 = vld [vmem:[#allocation2 + $0x10] sm:$0xff] }
  0x1d   :  { %v71_v41 = vld [vmem:[#allocation2 + $0x28] sm:$0xff]  ;;  %v69_v3 = vld [vmem:[#allocation2 + $0x18] sm:$0xff] }
  0x1e   :  { %93 = vadd.xlane.f32.xlu1 %v92_v17  ;;  %v72_v47 = vld [vmem:[#allocation2 + $0x30] sm:$0xff]  ;;  %v73_v1 = vld [vmem:[#allocation2 + $0x38] sm:$0xff] }
  0x1f   :  { %81 = vadd.xlane.f32.xlu0 %v80_v18  ;;  %v116_v53 = vld [vmem:[#allocation3 + $0x8] sm:$0xff] }
  0x20   :  { %v115_v54 = vld [vmem:[#allocation3] sm:$0xff]  ;;  %v117_v10 = vld [vmem:[#allocation3 + $0x10] sm:$0xff] }
  0x21   :  { %v119_v60 = vld [vmem:[#allocation3 + $0x20] sm:$0xff]  ;;  %v118_v17 = vld [vmem:[#allocation3 + $0x18] sm:$0xff] }
  0x22   :  { %127 = vmax.xlane.f32.xlu1 %v126_v19  ;;  %v120_v59 = vld [vmem:[#allocation3 + $0x28] sm:$0xff]  ;;  %v121_v7 = vld [vmem:[#allocation3 + $0x30] sm:$0xff] }
  0x23   :  { %124 = vmax.xlane.f32.xlu0 %v123_v20  ;;  %v122_v16 = vld [vmem:[#allocation3 + $0x38] sm:$0xff] }
  0x26   :  { %139 = vmax.xlane.f32.xlu1 %v138_v21 }
  0x27   :  { %136 = vmax.xlane.f32.xlu0 %v135_v24 }
  0x2a   :  { %96 = vadd.xlane.f32.xlu1 %v95_v27 }
  0x2b   :  { %84 = vadd.xlane.f32.xlu0 %v83_v28 }
  0x2e   :  { %142 = vmax.xlane.f32.xlu1 %v141_v30 }
  0x2f   :  { %130 = vmax.xlane.f32.xlu0 %v129_v31 }
  0x32   :  { %145 = vmax.xlane.f32.xlu1 %v144_v32 }
  0x33   :  { %133 = vmax.xlane.f32.xlu0 %v132_v33 }
  0xa3   :  { %v88_v37 = vpop.xlane.xlu1 %87 }
  0xa4   :  { %v102_v38 = vadd.f32 %v88_v37, %v70_v35  ;;  %v76_v39 = vpop.xlane.xlu0 %75 }
  0xa5   :  { %v98_v40 = vadd.f32 %v76_v39, %v66_v36 }
  0xa6   :  { %111 = vst.msk [vmem:[#allocation2 + $0x20] sm:$0xff] %vm33_vm0, %v102_v38 }
  0xa7   :  { %107 = vst.msk [vmem:[#allocation2] sm:$0xff] %vm33_vm0, %v98_v40  ;;  %v91_v43 = vpop.xlane.xlu1 %90 }
  0xa8   :  { %v103_v44 = vadd.f32 %v91_v43, %v71_v41  ;;  %v79_v45 = vpop.xlane.xlu0 %78 }
  0xa9   :  { %v99_v46 = vadd.f32 %v79_v45, %v67_v42 }
  0xaa   :  { %112 = vst.msk [vmem:[#allocation2 + $0x28] sm:$0xff] %vm33_vm0, %v103_v44  ;;  %v355_v44 = vld [vmem:[%s668_s2] sm:$0xf] }
  0xab   :  { %108 = vst.msk [vmem:[#allocation2 + $0x8] sm:$0xff] %vm33_vm0, %v99_v46  ;;  %v94_v49 = vpop.xlane.xlu1 %93  ;;  %462 = vmatpush3.msk.msra.mxu0 %vm359_vm1, %v355_v44 }
  0xac   :  { %v104_v50 = vadd.f32 %v94_v49, %v72_v47  ;;  %v82_v51 = vpop.xlane.xlu0 %81 }
  0xad   :  { %v100_v52 = vadd.f32 %v82_v51, %v68_v48  ;;  %v170_v33 = vld [vmem:[#allocation2 + $0x20] sm:$0xff] }
  0xae   :  { %113 = vst.msk [vmem:[#allocation2 + $0x30] sm:$0xff] %vm33_vm0, %v104_v50  ;;  %v166_v25 = vld [vmem:[#allocation2] sm:$0xff]  ;;  %v178_v35 = vmul.f32 0.00390625, %v170_v33  ;;  %v195_v50 = vld [vmem:[%s667_s1 + $0x28] sm:$0xff] }
  0xaf   :  { %109 = vst.msk [vmem:[#allocation2 + $0x10] sm:$0xff] %vm33_vm0, %v100_v52  ;;  %v128_v55 = vpop.xlane.xlu1 %127  ;;  %v174_v27 = vmul.f32 0.00390625, %v166_v25 }
  0xb0   :  { %v148_v56 = vmax.f32 %v116_v53, %v128_v55  ;;  %v125_v57 = vpop.xlane.xlu0 %124  ;;  %v194_v53 = vld [vmem:[%s667_s1 + $0x20] sm:$0xff] }
  0xb1   :  { %v147_v58 = vmax.f32 %v115_v54, %v125_v57  ;;  %v171_v36 = vld [vmem:[#allocation2 + $0x28] sm:$0xff] }
  0xb2   :  { %156 = vst.msk [vmem:[#allocation3 + $0x8] sm:$0xff] %vm33_vm0, %v148_v56  ;;  %v167_v29 = vld [vmem:[#allocation2 + $0x8] sm:$0xff]  ;;  %v179_v38 = vmul.f32 0.00390625, %v171_v36 }
  0xb3   :  { %155 = vst.msk [vmem:[#allocation3] sm:$0xff] %vm33_vm0, %v147_v58  ;;  %v140_v61 = vpop.xlane.xlu1 %139  ;;  %v175_v31 = vmul.f32 0.00390625, %v167_v29  ;;  %v193_v29 = vld [vmem:[%s667_s1 + $0x18] sm:$0xff] }
  0xb4   :  { %v152_v62 = vmax.f32 %v120_v59, %v140_v61  ;;  %v137_v63 = vpop.xlane.xlu0 %136 }
  0xb5   :  { %v151_v2 = vmax.f32 %v119_v60, %v137_v63  ;;  %v172_v28 = vld [vmem:[#allocation2 + $0x30] sm:$0xff] }
  0xb6   :  { %160 = vst.msk [vmem:[#allocation3 + $0x28] sm:$0xff] %vm33_vm0, %v152_v62  ;;  %v180_v30 = vmul.f32 0.00390625, %v172_v28  ;;  %v168_v39 = vld [vmem:[#allocation2 + $0x10] sm:$0xff] }
  0xb7   :  { %v97_v4 = vpop.xlane.xlu1 %96  ;;  %159 = vst.msk [vmem:[#allocation3 + $0x20] sm:$0xff] %vm33_vm0, %v151_v2  ;;  %v176_v40 = vmul.f32 0.00390625, %v168_v39 }
  0xb8   :  { %v105_v5 = vadd.f32 %v97_v4, %v73_v1  ;;  %v85_v6 = vpop.xlane.xlu0 %84 }
  0xb9   :  { %v101_v8 = vadd.f32 %v85_v6, %v69_v3  ;;  %v183_v13 = vld [vmem:[#allocation3 + $0x8] sm:$0xff]  ;;  %v197_v3 = vld [vmem:[%s667_s1 + $0x38] sm:$0xff] }
  0xba   :  { %114 = vst.msk [vmem:[#allocation2 + $0x38] sm:$0xff] %vm33_vm0, %v105_v5  ;;  %v182_v9 = vld [vmem:[#allocation3] sm:$0xff]  ;;  %v191_v5 = vld [vmem:[%s667_s1 + $0x8] sm:$0xff] }
  0xbb   :  { %248 = vperm.xlu1 %474, %v182_v9   ;;  %v143_v11 = vpop.xlane.xlu1 %142  ;;  %110 = vst.msk [vmem:[#allocation2 + $0x18] sm:$0xff] %vm33_vm0, %v101_v8  ;;  %v190_v8 = vld [vmem:[%s667_s1] sm:$0xff] }
  0xbc   :  { %v153_v12 = vmax.f32 %v121_v7, %v143_v11  ;;  %v131_v14 = vpop.xlane.xlu0 %130 }
  0xbd   :  { %v149_v15 = vmax.f32 %v117_v10, %v131_v14  ;;  %v187_v23 = vld [vmem:[#allocation3 + $0x28] sm:$0xff] }
  0xbe   :  { %161 = vst.msk [vmem:[#allocation3 + $0x30] sm:$0xff] %vm33_vm0, %v153_v12  ;;  %v186_v19 = vld [vmem:[#allocation3 + $0x20] sm:$0xff] }
  0xbf   :  { %253 = vperm.xlu1 %474, %v183_v13   ;;  %157 = vst.msk [vmem:[#allocation3 + $0x10] sm:$0xff] %vm33_vm0, %v149_v15  ;;  %v146_v18 = vpop.xlane.xlu1 %145 }
  0xc0   :  { %v154_v20 = vmax.f32 %v122_v16, %v146_v18  ;;  %v134_v21 = vpop.xlane.xlu0 %133 }
  0xc1   :  { %v150_v22 = vmax.f32 %v118_v17, %v134_v21  ;;  %v173_v32 = vld [vmem:[#allocation2 + $0x38] sm:$0xff] }
  0xc2   :  { %162 = vst.msk [vmem:[#allocation3 + $0x38] sm:$0xff] %vm33_vm0, %v154_v20  ;;  %v181_v34 = vmul.f32 0.00390625, %v173_v32  ;;  %v169_v41 = vld [vmem:[#allocation2 + $0x18] sm:$0xff] }
  0xc3   :  { %268 = vperm.xlu1 %474, %v186_v19   ;;  %158 = vst.msk [vmem:[#allocation3 + $0x18] sm:$0xff] %vm33_vm0, %v150_v22  ;;  %v177_v42 = vmul.f32 0.00390625, %v169_v41  ;;  %v192_v19 = vld [vmem:[%s667_s1 + $0x10] sm:$0xff]  ;;  %s535_s1 = smov [#allocation7]  }
  0xc4   :  { %s447_s15 = sshll.u32 %s535_s1, 4  ;;  %s448_s15 = int_to_ptr.vmem [resolvable:$true] %s447_s15 }
  0xc5   :  { %v188_v24 = vld [vmem:[#allocation3 + $0x30] sm:$0xff]  ;;  %s502_s16 = scalar_lea.vmem %s448_s15, 32  ;;  %p507_p9 = scmp.lt.s32.totalorder %s448_s15, %s448_s15 }
  0xc6   :  { %278 = vperm.xlu0 %475, %v188_v24   ;;  %v184_v26 = vld [vmem:[#allocation3 + $0x10] sm:$0xff]  ;;  %p503_p8 = scmp.ne.s32.totalorder %s448_s15, %s502_s16  ;;  %p508_p10 = scmp.lt.s32.totalorder %s502_s16, %s502_s16 }
  0xc7   :  { %273 = vperm.xlu1 %474, %v187_v23  }
  0xc8   :  { %p509_p11 = por %p508_p10, %p507_p9 }
  0xc9   :  { %v189_v37 = vld [vmem:[#allocation3 + $0x38] sm:$0xff] }
  0xca   :  { %200 = vperm.xlu0 %475, %v174_v27   ;;  %v185_v43 = vld [vmem:[#allocation3 + $0x18] sm:$0xff]  ;;  %p510_p12 = pnand %p509_p11, %p503_p8 }
  0xcb   :  { %258 = vperm.xlu1 %474, %v184_v26  }
  0xce   :  { %230 = vperm.xlu0 %475, %v180_v30  }
  0xcf   :  { %205 = vperm.xlu1 %474, %v175_v31  }
  0xd2   :  { %235 = vperm.xlu0 %475, %v181_v34  }
  0xd3   :  { %220 = vperm.xlu1 %474, %v178_v35  }
  0xd6   :  { %283 = vperm.xlu0 %475, %v189_v37  }
  0xd7   :  { %225 = vperm.xlu1 %474, %v179_v38  }
  0xdb   :  { %210 = vperm.xlu1 %474, %v176_v40  }
  0xdf   :  { %215 = vperm.xlu1 %474, %v177_v42  }
  0xe3   :  { %263 = vperm.xlu1 %474, %v185_v43  }
 0x13a   :  { %v249_v45 = vpop.permute.xlu1 %248 }
 0x13b   :  { %v286_v26 = vmul.f32 %v249_v45, %v190_v8 }
 0x13d   :  { %v308_v42 = vsel %vm294_vm3, %v286_v26, 0.0 }
 0x13e   :  { %v254_v46 = vpop.permute.xlu1 %253 }
 0x13f   :  { %v287_v22 = vmul.f32 %v254_v46, %v191_v5 }
 0x141   :  { %v309_v37 = vsel %vm294_vm3, %v287_v22, 0.0 }
 0x142   :  { %v269_v47 = vpop.permute.xlu1 %268  ;;  %v310_v45 = vadd.f32 %v309_v37, %v308_v42 }
 0x143   :  { %v290_v56 = vmul.f32 %v269_v47, %v194_v53 }
 0x145   :  { %v279_v48 = vpop.permute.xlu0 %278  ;;  %v337_v61 = vsel %vm294_vm3, %v290_v56, 0.0 }
 0x146   :  { %v274_v49 = vpop.permute.xlu1 %273  ;;  %v292_v58 = vmul.f32 %v279_v48, %v196_v0 }
 0x147   :  { %v291_v54 = vmul.f32 %v274_v49, %v195_v50 }
 0x148   :  { %v340_v1 = vsel %vm294_vm3, %v292_v58, 0.0 }
 0x149   :  { %v201_v51 = vpop.permute.xlu0 %200  ;;  %v338_v59 = vsel %vm294_vm3, %v291_v54, 0.0 }
 0x14a   :  { %v259_v52 = vpop.permute.xlu1 %258  ;;  %v339_v63 = vadd.f32 %v338_v59, %v337_v61  ;;  %v238_v13 = vmul.f32 %v201_v51, %v190_v8 }
 0x14b   :  { %v288_v30 = vmul.f32 %v259_v52, %v192_v19 }
 0x14c   :  { %v341_v12 = vadd.f32 %v340_v1, %v339_v63  ;;  %v295_v31 = vsel %vm294_vm3, %v238_v13, 0.0 }
 0x14d   :  { %v231_v55 = vpop.permute.xlu0 %230  ;;  %v311_v43 = vsel %vm294_vm3, %v288_v30, 0.0 }
 0x14e   :  { %v206_v57 = vpop.permute.xlu1 %205  ;;  %v244_v10 = vmul.f32 %v231_v55, %v196_v0 }
 0x14f   :  { %v239_v9 = vmul.f32 %v206_v57, %v191_v5 }
 0x150   :  { %v327_v24 = vsel %vm294_vm3, %v244_v10, 0.0 }
 0x151   :  { %v236_v60 = vpop.permute.xlu0 %235  ;;  %v296_v23 = vsel %vm294_vm3, %v239_v9, 0.0 }
 0x152   :  { %v221_v62 = vpop.permute.xlu1 %220  ;;  %v245_v16 = vmul.f32 %v236_v60, %v197_v3  ;;  %v297_v34 = vadd.f32 %v296_v23, %v295_v31 }
 0x153   :  { %v242_v2 = vmul.f32 %v221_v62, %v194_v53 }
 0x154   :  { %v329_v32 = vsel %vm294_vm3, %v245_v16, 0.0 }
 0x155   :  { %v284_v4 = vpop.permute.xlu0 %283  ;;  %v324_v15 = vsel %vm294_vm3, %v242_v2, 0.0 }
 0x156   :  { %v226_v6 = vpop.permute.xlu1 %225  ;;  %v293_v7 = vmul.f32 %v284_v4, %v197_v3 }
 0x157   :  { %v243_v11 = vmul.f32 %v226_v6, %v195_v50  ;;  %v312_v50 = vadd.f32 %v311_v43, %v310_v45 }
 0x158   :  { %v342_v14 = vsel %vm294_vm3, %v293_v7, 0.0 }
 0x159   :  { %v325_v17 = vsel %vm294_vm3, %v243_v11, 0.0  ;;  %v343_v18 = vadd.f32 %v342_v14, %v341_v12 }
 0x15a   :  { %v326_v20 = vadd.f32 %v325_v17, %v324_v15  ;;  %v211_v21 = vpop.permute.xlu1 %210 }
 0x15b   :  { %v240_v25 = vmul.f32 %v211_v21, %v192_v19  ;;  %v344_v28 = vrot.slane %v343_v18, 4 }
 0x15c   :  { %v328_v27 = vadd.f32 %v327_v24, %v326_v20 }
 0x15d   :  { %v298_v33 = vsel %vm294_vm3, %v240_v25, 0.0  ;;  %v345_v40 = vadd.f32 %v344_v28, %v343_v18 }
 0x15e   :  { %v330_v35 = vadd.f32 %v329_v32, %v328_v27  ;;  %v216_v36 = vpop.permute.xlu1 %215  ;;  %v299_v41 = vadd.f32 %v298_v33, %v297_v34 }
 0x15f   :  { %v241_v38 = vmul.f32 %v216_v36, %v193_v29  ;;  %v346_v52 = vrot.slane %v345_v40, 2 }
 0x160   :  { %v331_v39 = vrot.slane %v330_v35, 4 }
 0x161   :  { %v300_v44 = vsel %vm294_vm3, %v241_v38, 0.0  ;;  %v347_v57 = vadd.f32 %v346_v52, %v345_v40 }
 0x162   :  { %v332_v46 = vadd.f32 %v331_v39, %v330_v35  ;;  %v301_v47 = vadd.f32 %v300_v44, %v299_v41  ;;  %v264_v48 = vpop.permute.xlu1 %263 }
 0x163   :  { %v289_v49 = vmul.f32 %v264_v48, %v193_v29  ;;  %v348_v63 = vrot.slane %v347_v57, 1 }
 0x164   :  { %v333_v51 = vrot.slane %v332_v46, 2  ;;  %v302_v53 = vrot.slane %v301_v47, 4 }
 0x165   :  { %v313_v54 = vsel %vm294_vm3, %v289_v49, 0.0  ;;  %v349_v5 = vadd.f32 %v348_v63, %v347_v57 }
 0x166   :  { %v334_v0 = vadd.f32 %v333_v51, %v332_v46  ;;  %v303_v55 = vadd.f32 %v302_v53, %v301_v47  ;;  %v314_v56 = vadd.f32 %v313_v54, %v312_v50 }
 0x167   :  { %v351_v12 = vmax.f32 %v349_v5, 0.0 }
 0x168   :  { %v304_v58 = vrot.slane %v303_v55, 2  ;;  %v315_v59 = vrot.slane %v314_v56, 4  ;;  %v335_v62 = vrot.slane %v334_v0, 1 }
 0x16a   :  { %v305_v60 = vadd.f32 %v304_v58, %v303_v55  ;;  %v316_v61 = vadd.f32 %v315_v59, %v314_v56  ;;  %v336_v4 = vadd.f32 %v335_v62, %v334_v0 }
 0x16c   :  { %v306_v1 = vrot.slane %v305_v60, 1  ;;  %v317_v2 = vrot.slane %v316_v61, 2  ;;  %v350_v9 = vmax.f32 %v336_v4, 0.0 }
 0x16e   :  { %v318_v3 = vadd.f32 %v317_v2, %v316_v61  ;;  %v307_v6 = vadd.f32 %v306_v1, %v305_v60  ;;  %v352_v14 = vadd.f32 %v351_v12, %v350_v9 }
 0x170   :  { %v319_v7 = vrot.slane %v318_v3, 1  ;;  %v321_v10 = vmax.f32 %v307_v6, 0.0 }
 0x172   :  { %v320_v8 = vadd.f32 %v319_v7, %v318_v3 }
 0x174   :  { %v322_v11 = vmax.f32 %v320_v8, 0.0 }
 0x176   :  { %v323_v13 = vadd.f32 %v322_v11, %v321_v10 }
 0x178   :  { %v354_v15 = vsel %vm353_vm4, %v323_v13, %v352_v14 }
 0x179   :  { %464 = vmatmul.mubr.msk.f32.vlgmr.msra.gmra.mrb[0].mxu0 %vm294_vm3, %v354_v15 }
 0x24c   :  { %v429_v16 = vpop.f32.mrb[0].mxu0 }
 0x24d   :  { %v458_v17 = vmul.f32 -1.442695, %v429_v16  ;;  %v465_v18 = vpop.f32.mrb[1].mxu0 }
 0x24f   :  { %476 = vpow2.f32 %v458_v17 }
 0x259   :  { %v477_v19 = vpop.eup %476 }
 0x25a   :  { %v436_v20 = vadd.f32 1.0, %v477_v19 }
 0x25c   :  { %478 = vrcp.f32 %v436_v20 }
 0x266   :  { %v479_v21 = vpop.eup %478 }
 0x267   :  { %440 = vst.msk [vmem:[#allocation7] sm:$0x3] %vm439_vm5, %v479_v21 }
 0x268   :  { %513 = shalt.err (!%p510_p12)
}
 0x269   :  { %s514_s19 = scalar_lea.hbm %s669_s3, 32 }
 0x26a   :  { %p515_p13 = scmp.ne.s32.totalorder %s669_s3, %s514_s19  ;;  %p518_p0 = scmp.lt.u32.totalorder %s514_s19, %s669_s3 }
 0x26c   :  { %p520_p1 = pnand %p518_p0, %p515_p13 }
 0x26e   :  { %523 = shalt.err (!%p520_p1)
}
 0x26f   :  { %450 = dma.vmem_to_hbm [thread:$0]  %s448_s15, 32, %s669_s3, [#allocation6]  }
 0x270   :  { %526 = dma.done.wait [#allocation6], 32  }
 0x271   :  { %527 = vsyncadd [#allocation6], 4294967264 }
 0x272   :  { %454 = vsyncpa [#allocation5], 1 }
 0x273   :  { %455 = vsyncpa [#allocation6], 1 }

</bundles_post_ra>
